<compile_context>
chip_gen: v7x
topology: tpu7x:2x2x1
jax: 0.10.0
libtpu: 0.0.40
codegen_flags: <defaults>
</compile_context>

<pallas_src>
import jax
import jax.numpy as jnp
from jax.experimental import pallas as pl
from jax.experimental.pallas import tpu as pltpu

EMBED_DIM = 128          # embed_dim of the CLIP-style heads (lane-friendly)
VIDEO_FEAT_DIM = 2048    # ResNet3dSlowOnly(depth=50) output channels
SPEC_FEAT_DIM = 512      # Cnn14(embed_dim=512) framewise embedding dim
POOL_T = 16              # MaxPool1d(kernel_size=16) over the time axis
CLIPS_PER_BLOCK = 16     # clips per grid step -> 256-row M tile (v6e/v7x MXU);
                         # use 8 on v5e if tuning per-chip.


# ----------------------------------------------------------------------------
# Fused Pallas kernel: both heads, CLIPS_PER_BLOCK clips per grid step
# ----------------------------------------------------------------------------
def _cavp_heads_kernel(vfeat_ref, w_ref, b_ref, sfeat_ref, vout_ref, sout_ref):
    # vfeat_ref: (C*T, 2048) bf16 -- time-major video features for C clips
    # w_ref:     (2048, E)   bf16 -- video_project_head weight (x @ W layout)
    # b_ref:     (1, E)      f32  -- video_project_head bias
    # sfeat_ref: (C*T, 512)  bf16 -- framewise spec features (Identity head)
    # vout_ref:  (C, E)      f32  -- normalized pooled video features
    # sout_ref:  (C, 512)    f32  -- normalized pooled spec features
    c, e = vout_ref.shape
    ks = sout_ref.shape[-1]
    t = vfeat_ref.shape[0] // c

    # Linear projection head: one big bf16 MXU matmul over all C clips,
    # f32 accumulate.  Bias is added after the pool (exact equivalence).
    proj = jnp.dot(vfeat_ref[...], w_ref[...],
                   preferred_element_type=jnp.float32)          # (C*T, E)
    # MaxPool1d(kernel_size=16) over time: T == 16 -> single window per clip.
    v_pool = jnp.max(proj.reshape(c, t, e), axis=1) + b_ref[...]  # (C, E)
    # F.normalize(dim=-1): x / max(||x||, 1e-12) == x * rsqrt(max(||x||^2, 1e-24))
    v_sq = jnp.sum(v_pool * v_pool, axis=-1, keepdims=True)
    vout_ref[...] = v_pool * jax.lax.rsqrt(jnp.maximum(v_sq, 1e-24))

    # Spec path: Identity projection head -> MaxPool1d(16) -> normalize.
    # bf16 -> f32 upcast is cheap VPU filler; max is order-preserving.
    s = sfeat_ref[...].astype(jnp.float32)
    s_pool = jnp.max(s.reshape(c, t, ks), axis=1)                 # (C, 512)
    s_sq = jnp.sum(s_pool * s_pool, axis=-1, keepdims=True)
    sout_ref[...] = s_pool * jax.lax.rsqrt(jnp.maximum(s_sq, 1e-24))


def cavp_heads(vfeat, w, b, sfeat, *, clips_per_block=None):
    """vfeat: (B, T, 2048) bf16, w: (2048, E), b: (1, E), sfeat: (B, T, 512) bf16."""
    bsz, t, k = vfeat.shape
    e = w.shape[1]
    ks = sfeat.shape[-1]
    # MaxPool1d(kernel_size=16).squeeze(2) in the PyTorch forward only yields a
    # single pooled frame when the temporal extent is exactly 16.
    assert t == POOL_T and sfeat.shape[1] == POOL_T

    if clips_per_block is None:
        # 16 clips -> 256-row M tile (v6e/v7x MXU depth); for tiny inference
        # batches the whole batch runs in a single grid step.
        clips_per_block = min(CLIPS_PER_BLOCK, bsz)
    c = clips_per_block
    n_blocks = pl.cdiv(bsz, c)
    padded = n_blocks * c
    if padded != bsz:
        pad = padded - bsz
        vfeat = jnp.concatenate(
            [vfeat, jnp.zeros((pad, t, k), vfeat.dtype)], axis=0)
        sfeat = jnp.concatenate(
            [sfeat, jnp.zeros((pad, t, ks), sfeat.dtype)], axis=0)

    # Features arrive in bf16 from the encoders (no extra HBM cast pass); the
    # astype below is a no-op in that case.
    vfeat2d = vfeat.reshape(padded * t, k).astype(jnp.bfloat16)
    sfeat2d = sfeat.reshape(padded * t, ks).astype(jnp.bfloat16)
    w_bf16 = w.astype(jnp.bfloat16)
    b_f32 = b.astype(jnp.float32)

    cost = pl.CostEstimate(
        flops=2 * padded * t * k * e,
        transcendentals=2 * padded,
        bytes_accessed=(vfeat2d.size * 2 + w_bf16.size * 2 + b_f32.size * 4
                        + sfeat2d.size * 2 + padded * (e + ks) * 4),
    )

    vout, sout = pl.pallas_call(
        _cavp_heads_kernel,
        out_shape=(jax.ShapeDtypeStruct((padded, e), jnp.float32),
                   jax.ShapeDtypeStruct((padded, ks), jnp.float32)),
        grid=(n_blocks,),
        in_specs=[
            pl.BlockSpec((c * t, k), lambda i: (i, 0)),   # C clips of video feats
            pl.BlockSpec((k, e), lambda i: (0, 0)),       # weight, grid-invariant
            pl.BlockSpec((1, e), lambda i: (0, 0)),       # bias, grid-invariant
            pl.BlockSpec((c * t, ks), lambda i: (i, 0)),  # C clips of spec feats
        ],
        out_specs=(
            pl.BlockSpec((c, e), lambda i: (i, 0)),
            pl.BlockSpec((c, ks), lambda i: (i, 0)),
        ),
        compiler_params=pltpu.CompilerParams(
            dimension_semantics=("parallel",)),
        cost_estimate=cost,
    )(vfeat2d, w_bf16, b_f32, sfeat2d)

    return vout[:bsz], sout[:bsz]


# ----------------------------------------------------------------------------
# Stand-in backbone encoders (plain-JAX glue; exact backbones not provided)
# ----------------------------------------------------------------------------
def video_encoder_standin(video, w_enc):
    # video: (B, T, C, H, W).  PyTorch permutes to (B, C, T, H, W) for
    # ResNet3dSlowOnly which returns (B, 2048, T, 1, 1); the forward then does
    # reshape(bs, c, t).permute(0, 2, 1) -> (B, T, 2048).
    # TODO(synk): full ResNet3dSlowOnly(depth=50) 3D-conv backbone not provided;
    # stand-in = spatial global average pool + fixed linear channel lift.
    x = jnp.mean(video, axis=(3, 4))                       # (B, T, C)
    # Emit bf16 at the source: the head kernel's MXU operand needs no extra
    # HBM cast pass.
    return jnp.dot(x.astype(jnp.bfloat16), w_enc.astype(jnp.bfloat16),
                   preferred_element_type=jnp.bfloat16)    # (B, T, 2048) bf16


def spec_encoder_standin(spec, w_enc):
    # spec: (B, T_spec, n_mels).  PyTorch does unsqueeze(1)+permute to
    # (B, 1, n_mels, T_spec) before Cnn14, which emits framewise (B, 16, 512).
    # TODO(synk): full Cnn14 CNN backbone not provided; stand-in = temporal
    # average pooling to 16 frames + fixed linear mel lift.
    b, ts, m = spec.shape
    assert ts % POOL_T == 0
    x = jnp.mean(spec.reshape(b, POOL_T, ts // POOL_T, m), axis=2)  # (B, 16, M)
    return jnp.dot(x.astype(jnp.bfloat16), w_enc.astype(jnp.bfloat16),
                   preferred_element_type=jnp.bfloat16)             # (B, 16, 512) bf16


# ----------------------------------------------------------------------------
# CAVP_Inference forward
# ----------------------------------------------------------------------------
def cavp_forward(video, spec, params):
    # encode_video(normalize=True, pool=True) / encode_spec(normalize=True, pool=True)
    vfeat = video_encoder_standin(video, params["video_enc_w"])     # (B, 16, 2048)
    sfeat = spec_encoder_standin(spec, params["spec_enc_w"])        # (B, 16, 512)
    video_features, spec_features = cavp_heads(
        vfeat, params["video_proj_w"], params["video_proj_b"], sfeat)
    return {
        "video_features": video_features,
        "spec_features": spec_features,
        "logit_scale": jnp.exp(params["logit_scale"]),
    }


def init_params(key):
    k1, k2, k3, k4 = jax.random.split(key, 4)
    return {
        # stand-in encoder weights
        "video_enc_w": 0.02 * jax.random.normal(k1, (3, VIDEO_FEAT_DIM),
                                                jnp.float32),
        "spec_enc_w": 0.02 * jax.random.normal(k2, (32, SPEC_FEAT_DIM),
                                               jnp.float32),
        # video_project_head = nn.Linear(2048, embed_dim)
        "video_proj_w": 0.02 * jax.random.normal(k3, (VIDEO_FEAT_DIM, EMBED_DIM),
                                                 jnp.float32),
        "video_proj_b": 0.01 * jax.random.normal(k4, (1, EMBED_DIM),
                                                 jnp.float32),
        # self.logit_scale = nn.Parameter(ones([]) * log(1/0.07))
        "logit_scale": jnp.array(jnp.log(1.0 / 0.07), jnp.float32),
    }


def _heads_reference(vfeat, w, b, sfeat):
    # Pure-JAX reference of the head math (same bf16 matmul precision).
    proj = jnp.dot(vfeat.astype(jnp.bfloat16), w.astype(jnp.bfloat16),
                   preferred_element_type=jnp.float32)
    v_pool = jnp.max(proj, axis=1) + b
    v = v_pool / jnp.maximum(
        jnp.linalg.norm(v_pool, axis=-1, keepdims=True), 1e-12)
    s_pool = jnp.max(sfeat, axis=1).astype(jnp.float32)
    s = s_pool / jnp.maximum(
        jnp.linalg.norm(s_pool, axis=-1, keepdims=True), 1e-12)
    return v, s


def _check(out, video, spec, params, bsz):
    assert out["video_features"].shape == (bsz, EMBED_DIM)
    assert out["spec_features"].shape == (bsz, SPEC_FEAT_DIM)
    assert jnp.allclose(jnp.linalg.norm(out["video_features"], axis=-1), 1.0,
                        atol=1e-4)
    assert jnp.allclose(jnp.linalg.norm(out["spec_features"], axis=-1), 1.0,
                        atol=1e-4)
    assert jnp.allclose(out["logit_scale"], 1.0 / 0.07, rtol=1e-5)
    vfeat = video_encoder_standin(video, params["video_enc_w"])
    sfeat = spec_encoder_standin(spec, params["spec_enc_w"])
    v_ref, s_ref = _heads_reference(
        vfeat, params["video_proj_w"], params["video_proj_b"], sfeat)
    assert jnp.allclose(out["video_features"], v_ref, atol=1e-2, rtol=1e-2)
    assert jnp.allclose(out["spec_features"], s_ref, atol=1e-2, rtol=1e-2)


if __name__ == "__main__":
    key = jax.random.PRNGKey(0)
    kp, kv, ks, kv2, ks2 = jax.random.split(key, 5)

    params = init_params(kp)
    fwd = jax.jit(cavp_forward)

    # --- tiny inference batch: whole batch fits in a single grid step -------
    # video: (B, T=16 frames, C=3, H, W);  spec: (B, T_spec=64, n_mels=32)
    B = 2
    video = jax.random.normal(kv, (B, POOL_T, 3, 16, 16), jnp.float32)
    spec = jax.random.normal(ks, (B, 64, 32), jnp.float32)
    out = jax.block_until_ready(fwd(video, spec, params))
    _check(out, video, spec, params, B)

    # --- larger batch: exercises 256-row clip blocks, padding, 2-step grid ---
    B2 = 20  # pads to 32 -> grid=(2,), 16 clips (256 M rows) per step
    video2 = jax.random.normal(kv2, (B2, POOL_T, 3, 16, 16), jnp.float32)
    spec2 = jax.random.normal(ks2, (B2, 64, 32), jnp.float32)
    out2 = jax.block_until_ready(fwd(video2, spec2, params))
    _check(out2, video2, spec2, params, B2)

    print("KERNEL_OK")
</pallas_src>

<mosaic_0001>
module attributes {stable_mosaic.version = 11 : i64} {
  func.func @_cavp_heads_kernel(%arg0: i32, %arg1: memref<32x2048xbf16, #tpu.memory_space<vmem>>, %arg2: memref<2048x128xbf16, #tpu.memory_space<vmem>>, %arg3: memref<1x128xf32, #tpu.memory_space<vmem>>, %arg4: memref<32x512xbf16, #tpu.memory_space<vmem>>, %arg5: memref<2x128xf32, #tpu.memory_space<vmem>>, %arg6: memref<2x512xf32, #tpu.memory_space<vmem>>) attributes {dimension_semantics = [#tpu.dimension_semantics<parallel>], iteration_bounds = array<i64: 1>, scalar_prefetch = 0 : i64, scratch_operands = 0 : i64, tpu.core_type = #tpu.core_type<tc>, window_params = [{transform_indices = @transform_0, window_bounds = array<i64: 32, 2048>}, {pipeline_mode = #tpu.pipeline_mode<synchronous>, transform_indices = @transform_1, window_bounds = array<i64: 2048, 128>}, {pipeline_mode = #tpu.pipeline_mode<synchronous>, transform_indices = @transform_2, window_bounds = array<i64: 1, 128>}, {transform_indices = @transform_3, window_bounds = array<i64: 32, 512>}, {transform_indices = @transform_4, window_bounds = array<i64: 2, 128>}, {transform_indices = @transform_5, window_bounds = array<i64: 2, 512>}]} {
    %c0 = arith.constant 0 : index
    %c0_0 = arith.constant 0 : index
    %0 = vector.load %arg1[%c0, %c0_0] : memref<32x2048xbf16, #tpu.memory_space<vmem>>, vector<32x2048xbf16>
    %c0_1 = arith.constant 0 : index
    %c0_2 = arith.constant 0 : index
    %1 = vector.load %arg2[%c0_1, %c0_2] : memref<2048x128xbf16, #tpu.memory_space<vmem>>, vector<2048x128xbf16>
    %cst = arith.constant dense<0.000000e+00> : vector<32x128xf32>
    %2 = tpu.matmul %0, %1, %cst {dimension_numbers = #tpu.dot_dimension_numbers<[1], [0], [0], [1], [0, 0, 1, 1], [], []>} : vector<32x2048xbf16>, vector<2048x128xbf16>, vector<32x128xf32> -> vector<32x128xf32>
    %3 = vector.shape_cast %2 : vector<32x128xf32> to vector<2x16x128xf32>
    %cst_3 = arith.constant dense<0xFF800000> : vector<2x128xf32>
    %4 = vector.multi_reduction <maximumf>, %3, %cst_3 [1] : vector<2x16x128xf32> to vector<2x128xf32>
    %c0_4 = arith.constant 0 : index
    %c0_5 = arith.constant 0 : index
    %5 = vector.load %arg3[%c0_4, %c0_5] : memref<1x128xf32, #tpu.memory_space<vmem>>, vector<1x128xf32>
    %6 = vector.broadcast %5 : vector<1x128xf32> to vector<2x128xf32>
    %7 = arith.addf %4, %6 : vector<2x128xf32>
    %8 = arith.mulf %7, %7 : vector<2x128xf32>
    %cst_6 = arith.constant dense<0.000000e+00> : vector<2xf32>
    %9 = vector.multi_reduction <add>, %8, %cst_6 [1] : vector<2x128xf32> to vector<2xf32>
    %10 = vector.shape_cast %9 : vector<2xf32> to vector<2x1xf32>
    %cst_7 = arith.constant 1.000000e-24 : f32
    %11 = vector.broadcast %cst_7 : f32 to vector<2x1xf32>
    %12 = arith.maximumf %10, %11 : vector<2x1xf32>
    %13 = math.rsqrt %12 : vector<2x1xf32>
    %14 = vector.broadcast %13 : vector<2x1xf32> to vector<2x128xf32>
    %15 = arith.mulf %7, %14 : vector<2x128xf32>
    %c0_8 = arith.constant 0 : index
    %c0_9 = arith.constant 0 : index
    %16 = vector.load %arg5[%c0_8, %c0_9] : memref<2x128xf32, #tpu.memory_space<vmem>>, vector<2x128xf32>
    tpu.vector_store %arg5[%c0_8, %c0_9], %15 {strides = array<i32>} : memref<2x128xf32, #tpu.memory_space<vmem>>, vector<2x128xf32>,
    %c0_10 = arith.constant 0 : index
    %c0_11 = arith.constant 0 : index
    %17 = vector.load %arg4[%c0_10, %c0_11] : memref<32x512xbf16, #tpu.memory_space<vmem>>, vector<32x512xbf16>
    %18 = arith.extf %17 : vector<32x512xbf16> to vector<32x512xf32>
    %19 = vector.shape_cast %18 : vector<32x512xf32> to vector<2x16x512xf32>
    %cst_12 = arith.constant dense<0xFF800000> : vector<2x512xf32>
    %20 = vector.multi_reduction <maximumf>, %19, %cst_12 [1] : vector<2x16x512xf32> to vector<2x512xf32>
    %21 = arith.mulf %20, %20 : vector<2x512xf32>
    %cst_13 = arith.constant dense<0.000000e+00> : vector<2xf32>
    %22 = vector.multi_reduction <add>, %21, %cst_13 [1] : vector<2x512xf32> to vector<2xf32>
    %23 = vector.shape_cast %22 : vector<2xf32> to vector<2x1xf32>
    %cst_14 = arith.constant 1.000000e-24 : f32
    %24 = vector.broadcast %cst_14 : f32 to vector<2x1xf32>
    %25 = arith.maximumf %23, %24 : vector<2x1xf32>
    %26 = math.rsqrt %25 : vector<2x1xf32>
    %27 = vector.broadcast %26 : vector<2x1xf32> to vector<2x512xf32>
    %28 = arith.mulf %20, %27 : vector<2x512xf32>
    %c0_15 = arith.constant 0 : index
    %c0_16 = arith.constant 0 : index
    %29 = vector.load %arg6[%c0_15, %c0_16] : memref<2x512xf32, #tpu.memory_space<vmem>>, vector<2x512xf32>
    tpu.vector_store %arg6[%c0_15, %c0_16], %28 {strides = array<i32>} : memref<2x512xf32, #tpu.memory_space<vmem>>, vector<2x512xf32>,
    return
  }
  func.func @transform_0(%arg0: i32) -> (i32, i32) {
    %c0_i32 = arith.constant 0 : i32
    %c0_i32_0 = arith.constant 0 : i32
    return %arg0, %c0_i32 : i32, i32
  }
  func.func @transform_1(%arg0: i32) -> (i32, i32) {
    %c0_i32 = arith.constant 0 : i32
    %c0_i32_0 = arith.constant 0 : i32
    %c0_i32_1 = arith.constant 0 : i32
    return %c0_i32, %c0_i32_0 : i32, i32
  }
  func.func @transform_2(%arg0: i32) -> (i32, i32) {
    %c0_i32 = arith.constant 0 : i32
    %c0_i32_0 = arith.constant 0 : i32
    %c0_i32_1 = arith.constant 0 : i32
    return %c0_i32, %c0_i32_0 : i32, i32
  }
  func.func @transform_3(%arg0: i32) -> (i32, i32) {
    %c0_i32 = arith.constant 0 : i32
    %c0_i32_0 = arith.constant 0 : i32
    return %arg0, %c0_i32 : i32, i32
  }
  func.func @transform_4(%arg0: i32) -> (i32, i32) {
    %c0_i32 = arith.constant 0 : i32
    %c0_i32_0 = arith.constant 0 : i32
    return %arg0, %c0_i32 : i32, i32
  }
  func.func @transform_5(%arg0: i32) -> (i32, i32) {
    %c0_i32 = arith.constant 0 : i32
    %c0_i32_0 = arith.constant 0 : i32
    return %arg0, %c0_i32 : i32, i32
  }
}

</mosaic_0001>

<bundles_post_ra>
// kernel: cavp_forward.1
= control target key start
LH: loop header
LB: loop body
LE: loop exit
PB: predicated region body
PF: predicated region fallthrough
CT: control target
= control target key end

     0   :  { %11 = vsyncpa [#allocation3], 0  ;;  %s3084_s0 = inlined_call_operand.vmem [shape: bf16[32,2048], index: 0, kind: input, shape index: {}]   ;;  %s3085_s1 = inlined_call_operand.vmem [shape: bf16[2048,128], index: 1, kind: input, shape index: {}]   ;;  %s3086_s2 = inlined_call_operand.vmem [shape: f32[1,128], index: 2, kind: input, shape index: {}]   ;;  %s3087_s3 = inlined_call_operand.vmem [shape: bf16[32,512], index: 3, kind: input, shape index: {}]   ;;  %s3088_s4 = inlined_call_operand.hbm [shape: f32[2,128], index: 4, kind: output, shape index: {0}]   ;;  %s3089_s5 = inlined_call_operand.hbm [shape: f32[2,512], index: 5, kind: output, shape index: {1}]  }
   0x1   :  { %v2278_v0 = vld [vmem:[%s3085_s1 + $0x40] sm:$0xff]   ;;  %v2282_v4 = vld [vmem:[%s3085_s1 + $0x48] sm:$0xff]   ;;  %v2286_v8 = vld [vmem:[%s3085_s1 + $0x50] sm:$0xff]  }
   0x2   :  { %v2279_v1 = vld [vmem:[%s3085_s1 + $0xc0] sm:$0xff]   ;;  %2051 = vmatprep.subr.bf16.mxu0 %v2278_v0  ;;  %v2283_v5 = vld [vmem:[%s3085_s1 + $0xc8] sm:$0xff]   ;;  %v2287_v9 = vld [vmem:[%s3085_s1 + $0xd0] sm:$0xff]  }
   0x3   :  { %v2280_v2 = vld [vmem:[%s3085_s1] sm:$0xff]   ;;  %2079 = vmatprep.subr.bf16.mxu1 %v2279_v1  ;;  %v2284_v6 = vld [vmem:[%s3085_s1 + $0x8] sm:$0xff]   ;;  %v2288_v10 = vld [vmem:[%s3085_s1 + $0x10] sm:$0xff]  }
   0x4   :  { %v2281_v3 = vld [vmem:[%s3085_s1 + $0x80] sm:$0xff]   ;;  %2052 = vmatpush3.bf16.msra.mxu0 %v2280_v2  ;;  %v2285_v7 = vld [vmem:[%s3085_s1 + $0x88] sm:$0xff]   ;;  %v2289_v11 = vld [vmem:[%s3085_s1 + $0x90] sm:$0xff]  }
   0x5   :  { %2080 = vmatpush3.bf16.msra.mxu1 %v2281_v3  ;;  %2053 = vmatprep.subr.bf16.mxu0 %v2282_v4  ;;  %v2290_v12 = vld [vmem:[%s3085_s1 + $0x58] sm:$0xff]   ;;  %v2294_v16 = vld [vmem:[%s3085_s1 + $0x60] sm:$0xff]   ;;  %v2298_v20 = vld [vmem:[%s3085_s1 + $0x68] sm:$0xff]  }
   0x6   :  { %2081 = vmatprep.subr.bf16.mxu1 %v2283_v5  ;;  %v2291_v13 = vld [vmem:[%s3085_s1 + $0xd8] sm:$0xff]   ;;  %v2295_v17 = vld [vmem:[%s3085_s1 + $0xe0] sm:$0xff]   ;;  %v2299_v21 = vld [vmem:[%s3085_s1 + $0xe8] sm:$0xff]  }
   0x7   :  { %v2292_v14 = vld [vmem:[%s3085_s1 + $0x18] sm:$0xff]   ;;  %v2296_v18 = vld [vmem:[%s3085_s1 + $0x20] sm:$0xff]   ;;  %v2300_v22 = vld [vmem:[%s3085_s1 + $0x28] sm:$0xff]  }
   0x8   :  { %2054 = vmatpush3.bf16.msra.mxu0 %v2284_v6  ;;  %v2293_v15 = vld [vmem:[%s3085_s1 + $0x98] sm:$0xff]   ;;  %v2297_v19 = vld [vmem:[%s3085_s1 + $0xa0] sm:$0xff]   ;;  %v2301_v23 = vld [vmem:[%s3085_s1 + $0xa8] sm:$0xff]  }
   0x9   :  { %2082 = vmatpush3.bf16.msra.mxu1 %v2285_v7  ;;  %2055 = vmatprep.subr.bf16.mxu0 %v2286_v8  ;;  %v2302_v24 = vld [vmem:[%s3085_s1 + $0x70] sm:$0xff]   ;;  %v2306_v28 = vld [vmem:[%s3085_s1 + $0x78] sm:$0xff]   ;;  %v22_v32 = vld [vmem:[%s3084_s0] sm:$0xff] }
   0xa   :  { %2083 = vmatprep.subr.bf16.mxu1 %v2287_v9  ;;  %v2303_v25 = vld [vmem:[%s3085_s1 + $0xf0] sm:$0xff]   ;;  %v2307_v29 = vld [vmem:[%s3085_s1 + $0xf8] sm:$0xff]   ;;  %v30_v33 = vld [vmem:[%s3084_s0 + $0x40] sm:$0xff] }
   0xb   :  { %v2304_v26 = vld [vmem:[%s3085_s1 + $0x30] sm:$0xff]   ;;  %v2308_v30 = vld [vmem:[%s3085_s1 + $0x38] sm:$0xff]   ;;  %v23_v34 = vld [vmem:[%s3084_s0 + $0x8] sm:$0xff]  ;;  %v1890_v35 = vcombine.low %v22_v32, %v30_v33  ;;  %v1891_v36 = vcombine.high %v22_v32, %v30_v33 }
   0xc   :  { %2056 = vmatpush3.bf16.msra.mxu0 %v2288_v10  ;;  %v2305_v27 = vld [vmem:[%s3085_s1 + $0xb0] sm:$0xff]   ;;  %v2309_v31 = vld [vmem:[%s3085_s1 + $0xb8] sm:$0xff]   ;;  %v31_v37 = vld [vmem:[%s3084_s0 + $0x48] sm:$0xff] }
   0xd   :  { %2084 = vmatpush3.bf16.msra.mxu1 %v2289_v11  ;;  %2057 = vmatprep.subr.bf16.mxu0 %v2290_v12  ;;  %v1892_v38 = vcombine.low %v23_v34, %v31_v37  ;;  %v1893_v39 = vcombine.high %v23_v34, %v31_v37  ;;  %v2310_v40 = vld [vmem:[%s3085_s1 + $0x140] sm:$0xff]   ;;  %v2314_v44 = vld [vmem:[%s3085_s1 + $0x148] sm:$0xff]   ;;  %v2318_v48 = vld [vmem:[%s3085_s1 + $0x150] sm:$0xff]  }
   0xe   :  { %2085 = vmatprep.subr.bf16.mxu1 %v2291_v13  ;;  %1270 = vmatprep.mubr.bf16.mxu0 %v1891_v36  ;;  %v2311_v41 = vld [vmem:[%s3085_s1 + $0x1c0] sm:$0xff]   ;;  %v2315_v45 = vld [vmem:[%s3085_s1 + $0x1c8] sm:$0xff]   ;;  %v2319_v49 = vld [vmem:[%s3085_s1 + $0x1d0] sm:$0xff]  }
   0xf   :  { %1319 = vmatprep.mubr.bf16.mxu1 %v1893_v39  ;;  %v2312_v42 = vld [vmem:[%s3085_s1 + $0x100] sm:$0xff]   ;;  %v2316_v46 = vld [vmem:[%s3085_s1 + $0x108] sm:$0xff]   ;;  %v2320_v50 = vld [vmem:[%s3085_s1 + $0x110] sm:$0xff]  }
  0x10   :  { %2058 = vmatpush3.bf16.msra.mxu0 %v2292_v14  ;;  %v2313_v43 = vld [vmem:[%s3085_s1 + $0x180] sm:$0xff]   ;;  %v2317_v47 = vld [vmem:[%s3085_s1 + $0x188] sm:$0xff]   ;;  %v2321_v51 = vld [vmem:[%s3085_s1 + $0x190] sm:$0xff]  }
  0x11   :  { %2086 = vmatpush3.bf16.msra.mxu1 %v2293_v15  ;;  %2059 = vmatprep.subr.bf16.mxu0 %v2294_v16  ;;  %v2322_v52 = vld [vmem:[%s3085_s1 + $0x158] sm:$0xff]   ;;  %v2326_v56 = vld [vmem:[%s3085_s1 + $0x160] sm:$0xff]   ;;  %v2330_v60 = vld [vmem:[%s3085_s1 + $0x168] sm:$0xff]  }
  0x12   :  { %2087 = vmatprep.subr.bf16.mxu1 %v2295_v17  ;;  %v2323_v53 = vld [vmem:[%s3085_s1 + $0x1d8] sm:$0xff]   ;;  %v2327_v57 = vld [vmem:[%s3085_s1 + $0x1e0] sm:$0xff]   ;;  %v2331_v61 = vld [vmem:[%s3085_s1 + $0x1e8] sm:$0xff]  }
  0x13   :  { %v2324_v54 = vld [vmem:[%s3085_s1 + $0x118] sm:$0xff]   ;;  %v2328_v58 = vld [vmem:[%s3085_s1 + $0x120] sm:$0xff]   ;;  %v39_v1 = vld [vmem:[%s3084_s0 + $0x88] sm:$0xff] }
  0x14   :  { %2060 = vmatpush3.bf16.msra.mxu0 %v2296_v18  ;;  %v2325_v55 = vld [vmem:[%s3085_s1 + $0x198] sm:$0xff]   ;;  %v2329_v59 = vld [vmem:[%s3085_s1 + $0x1a0] sm:$0xff]   ;;  %v47_v2 = vld [vmem:[%s3084_s0 + $0xc8] sm:$0xff] }
  0x15   :  { %2088 = vmatpush3.bf16.msra.mxu1 %v2297_v19  ;;  %2061 = vmatprep.subr.bf16.mxu0 %v2298_v20  ;;  %v38_v62 = vld [vmem:[%s3084_s0 + $0x80] sm:$0xff]  ;;  %v1909_v4 = vcombine.high %v39_v1, %v47_v2  ;;  %v2332_v5 = vld [vmem:[%s3085_s1 + $0x128] sm:$0xff]   ;;  %v1908_v6 = vcombine.low %v39_v1, %v47_v2  ;;  %v2334_v8 = vld [vmem:[%s3085_s1 + $0x170] sm:$0xff]  }
  0x16   :  { %2089 = vmatprep.subr.bf16.mxu1 %v2299_v21  ;;  %v46_v63 = vld [vmem:[%s3084_s0 + $0xc0] sm:$0xff]  ;;  %v2333_v7 = vld [vmem:[%s3085_s1 + $0x1a8] sm:$0xff]   ;;  %v2335_v9 = vld [vmem:[%s3085_s1 + $0x1f0] sm:$0xff]  }
  0x17   :  { %v1907_v0 = vcombine.high %v38_v62, %v46_v63  ;;  %v1906_v3 = vcombine.low %v38_v62, %v46_v63  ;;  %v2336_v10 = vld [vmem:[%s3085_s1 + $0x130] sm:$0xff]   ;;  %v2338_v12 = vld [vmem:[%s3085_s1 + $0x178] sm:$0xff]   ;;  %v34_v1 = vld [vmem:[%s3084_s0 + $0x60] sm:$0xff] }
  0x18   :  { %2062 = vmatpush3.bf16.msra.mxu0 %v2300_v22  ;;  %v2337_v11 = vld [vmem:[%s3085_s1 + $0x1b0] sm:$0xff]   ;;  %v2339_v13 = vld [vmem:[%s3085_s1 + $0x1f8] sm:$0xff]  }
  0x19   :  { %2090 = vmatpush3.bf16.msra.mxu1 %v2301_v23  ;;  %2063 = vmatprep.subr.bf16.mxu0 %v2302_v24  ;;  %v2340_v14 = vld [vmem:[%s3085_s1 + $0x138] sm:$0xff]   ;;  %v24_v16 = vld [vmem:[%s3084_s0 + $0x10] sm:$0xff]  ;;  %v2342_v24 = vld [vmem:[%s3085_s1 + $0x240] sm:$0xff]  }
  0x1a   :  { %2091 = vmatprep.subr.bf16.mxu1 %v2303_v25  ;;  %v2341_v15 = vld [vmem:[%s3085_s1 + $0x1b8] sm:$0xff]   ;;  %v32_v17 = vld [vmem:[%s3084_s0 + $0x50] sm:$0xff]  ;;  %v2343_v25 = vld [vmem:[%s3085_s1 + $0x2c0] sm:$0xff]  }
  0x1b   :  { %v25_v18 = vld [vmem:[%s3084_s0 + $0x18] sm:$0xff]  ;;  %v1894_v20 = vcombine.low %v24_v16, %v32_v17  ;;  %v1895_v21 = vcombine.high %v24_v16, %v32_v17  ;;  %v40_v32 = vld [vmem:[%s3084_s0 + $0x90] sm:$0xff]  ;;  %v42_v16 = vld [vmem:[%s3084_s0 + $0xa0] sm:$0xff] }
  0x1c   :  { %2064 = vmatpush3.bf16.msra.mxu0 %v2304_v26  ;;  %v33_v19 = vld [vmem:[%s3084_s0 + $0x58] sm:$0xff]  ;;  %v2344_v26 = vld [vmem:[%s3085_s1 + $0x200] sm:$0xff]   ;;  %v48_v33 = vld [vmem:[%s3084_s0 + $0xd0] sm:$0xff] }
  0x1d   :  { %2092 = vmatpush3.bf16.msra.mxu1 %v2305_v27  ;;  %2065 = vmatprep.subr.bf16.mxu0 %v2306_v28  ;;  %v1896_v22 = vcombine.low %v25_v18, %v33_v19  ;;  %v1897_v23 = vcombine.high %v25_v18, %v33_v19  ;;  %v2345_v27 = vld [vmem:[%s3085_s1 + $0x280] sm:$0xff]   ;;  %v2346_v28 = vld [vmem:[%s3085_s1 + $0x248] sm:$0xff]   ;;  %v1911_v34 = vcombine.high %v40_v32, %v48_v33  ;;  %v2350_v36 = vld [vmem:[%s3085_s1 + $0x250] sm:$0xff]  }
  0x1e   :  { %2093 = vmatprep.subr.bf16.mxu1 %v2307_v29  ;;  %v2347_v29 = vld [vmem:[%s3085_s1 + $0x2c8] sm:$0xff]   ;;  %v2351_v37 = vld [vmem:[%s3085_s1 + $0x2d0] sm:$0xff]   ;;  %v49_v39 = vld [vmem:[%s3084_s0 + $0xd8] sm:$0xff] }
  0x1f   :  { %v2372_v62 = vld [vmem:[%s3085_s1 + $0x238] sm:$0xff]   ;;  %v50_v17 = vld [vmem:[%s3084_s0 + $0xe0] sm:$0xff] }
  0x20   :  { %2066 = vmatpush3.bf16.msra.mxu0 %v2308_v30  ;;  %v2348_v30 = vld [vmem:[%s3085_s1 + $0x208] sm:$0xff]   ;;  %v2373_v63 = vld [vmem:[%s3085_s1 + $0x2b8] sm:$0xff]   ;;  %v1915_v18 = vcombine.high %v42_v16, %v50_v17  ;;  %v1914_v19 = vcombine.low %v42_v16, %v50_v17 }
  0x21   :  { %2094 = vmatpush3.bf16.msra.mxu1 %v2309_v31  ;;  %2107 = vmatprep.subr.bf16.mxu0 %v2310_v40  ;;  %v2349_v31 = vld [vmem:[%s3085_s1 + $0x288] sm:$0xff]  }
  0x22   :  { %2135 = vmatprep.subr.bf16.mxu1 %v2311_v41  ;;  %v2352_v41 = vld [vmem:[%s3085_s1 + $0x210] sm:$0xff]  }
  0x23   :  { %1271 = vmatmul.mubr.bf16.vlgmr.msra.gmra.mrb[0].mxu0 %v1890_v35  ;;  %v1910_v35 = vcombine.low %v40_v32, %v48_v33  ;;  %v2390_v32 = vld [vmem:[%s3085_s1 + $0x360] sm:$0xff]  }
  0x24   :  { %1320 = vmatmul.mubr.bf16.vlgmr.msra.gmra.mrb[0].mxu1 %v1892_v38  ;;  %2108 = vmatpush3.bf16.msra.mxu0 %v2312_v42  ;;  %v41_v38 = vld [vmem:[%s3084_s0 + $0x98] sm:$0xff]  ;;  %v2391_v33 = vld [vmem:[%s3085_s1 + $0x3e0] sm:$0xff]  }
  0x25   :  { %2136 = vmatpush3.bf16.msra.mxu1 %v2313_v43  ;;  %2109 = vmatprep.subr.bf16.mxu0 %v2314_v44  ;;  %v1913_v40 = vcombine.high %v41_v38, %v49_v39  ;;  %v1912_v42 = vcombine.low %v41_v38, %v49_v39  ;;  %v2353_v43 = vld [vmem:[%s3085_s1 + $0x290] sm:$0xff]   ;;  %v2354_v44 = vld [vmem:[%s3085_s1 + $0x258] sm:$0xff]   ;;  %v2396_v38 = vld [vmem:[%s3085_s1 + $0x328] sm:$0xff]  }
  0x26   :  { %2137 = vmatprep.subr.bf16.mxu1 %v2315_v45  ;;  %1278 = vmatprep.mubr.bf16.mxu0 %v1907_v0  ;;  %v2355_v45 = vld [vmem:[%s3085_s1 + $0x2d8] sm:$0xff]   ;;  %v26_v0 = vld [vmem:[%s3084_s0 + $0x20] sm:$0xff]  ;;  %v2397_v39 = vld [vmem:[%s3085_s1 + $0x3a8] sm:$0xff]  }
  0x27   :  { %1327 = vmatprep.mubr.bf16.mxu1 %v1909_v4  ;;  %v1898_v2 = vcombine.low %v26_v0, %v34_v1  ;;  %v27_v4 = vld [vmem:[%s3084_s0 + $0x28] sm:$0xff] }
  0x28   :  { %2110 = vmatpush3.bf16.msra.mxu0 %v2316_v46  ;;  %v2356_v46 = vld [vmem:[%s3085_s1 + $0x218] sm:$0xff]  }
  0x29   :  { %2138 = vmatpush3.bf16.msra.mxu1 %v2317_v47  ;;  %2111 = vmatprep.subr.bf16.mxu0 %v2318_v48  ;;  %v2357_v47 = vld [vmem:[%s3085_s1 + $0x298] sm:$0xff]   ;;  %v2358_v48 = vld [vmem:[%s3085_s1 + $0x260] sm:$0xff]  }
  0x2a   :  { %2139 = vmatprep.subr.bf16.mxu1 %v2319_v49  ;;  %v2359_v49 = vld [vmem:[%s3085_s1 + $0x2e0] sm:$0xff]  }
  0x2b   :  { %1279 = vmatmul.mubr.bf16.gmra.mrb[4].mxu0 %v1906_v3  ;;  %v1899_v3 = vcombine.high %v26_v0, %v34_v1 }
  0x2c   :  { %2112 = vmatpush3.bf16.msra.mxu0 %v2320_v50  ;;  %1328 = vmatmul.mubr.bf16.gmra.mrb[4].mxu1 %v1908_v6  ;;  %v2360_v50 = vld [vmem:[%s3085_s1 + $0x220] sm:$0xff]  }
  0x2d   :  { %2140 = vmatpush3.bf16.msra.mxu1 %v2321_v51  ;;  %2113 = vmatprep.subr.bf16.mxu0 %v2322_v52  ;;  %v2361_v51 = vld [vmem:[%s3085_s1 + $0x2a0] sm:$0xff]   ;;  %v2362_v52 = vld [vmem:[%s3085_s1 + $0x268] sm:$0xff]  }
  0x2e   :  { %2141 = vmatprep.subr.bf16.mxu1 %v2323_v53  ;;  %1368 = vmatprep.mubr.bf16.mxu0 %v1895_v21  ;;  %v2363_v53 = vld [vmem:[%s3085_s1 + $0x2e8] sm:$0xff]   ;;  %v2383_v21 = vld [vmem:[%s3085_s1 + $0x3d0] sm:$0xff]  }
  0x2f   :  { %1417 = vmatprep.mubr.bf16.mxu1 %v1897_v23  ;;  %v51_v23 = vld [vmem:[%s3084_s0 + $0xe8] sm:$0xff] }
  0x30   :  { %2114 = vmatpush3.bf16.msra.mxu0 %v2324_v54  ;;  %v2364_v54 = vld [vmem:[%s3085_s1 + $0x228] sm:$0xff]  }
  0x31   :  { %2142 = vmatpush3.bf16.msra.mxu1 %v2325_v55  ;;  %2115 = vmatprep.subr.bf16.mxu0 %v2326_v56  ;;  %v2365_v55 = vld [vmem:[%s3085_s1 + $0x2a8] sm:$0xff]   ;;  %v2366_v56 = vld [vmem:[%s3085_s1 + $0x270] sm:$0xff]  }
  0x32   :  { %2143 = vmatprep.subr.bf16.mxu1 %v2327_v57  ;;  %v2367_v57 = vld [vmem:[%s3085_s1 + $0x2f0] sm:$0xff]  }
  0x34   :  { %2116 = vmatpush3.bf16.msra.mxu0 %v2328_v58  ;;  %v2368_v58 = vld [vmem:[%s3085_s1 + $0x230] sm:$0xff]  }
  0x35   :  { %2144 = vmatpush3.bf16.msra.mxu1 %v2329_v59  ;;  %2117 = vmatprep.subr.bf16.mxu0 %v2330_v60  ;;  %v2369_v59 = vld [vmem:[%s3085_s1 + $0x2b0] sm:$0xff]   ;;  %v2370_v60 = vld [vmem:[%s3085_s1 + $0x278] sm:$0xff]  }
  0x36   :  { %2145 = vmatprep.subr.bf16.mxu1 %v2331_v61  ;;  %v2371_v61 = vld [vmem:[%s3085_s1 + $0x2f8] sm:$0xff]  }
  0x38   :  { %2118 = vmatpush3.bf16.msra.mxu0 %v2332_v5  ;;  %v35_v5 = vld [vmem:[%s3084_s0 + $0x68] sm:$0xff] }
  0x39   :  { %2146 = vmatpush3.bf16.msra.mxu1 %v2333_v7  ;;  %2119 = vmatprep.subr.bf16.mxu0 %v2334_v8  ;;  %v1900_v6 = vcombine.low %v27_v4, %v35_v5  ;;  %v1901_v7 = vcombine.high %v27_v4, %v35_v5  ;;  %v2374_v8 = vld [vmem:[%s3085_s1 + $0x340] sm:$0xff]  }
  0x3a   :  { %2147 = vmatprep.subr.bf16.mxu1 %v2335_v9  ;;  %v2375_v9 = vld [vmem:[%s3085_s1 + $0x3c0] sm:$0xff]  }
  0x3c   :  { %2120 = vmatpush3.bf16.msra.mxu0 %v2336_v10  ;;  %v2376_v10 = vld [vmem:[%s3085_s1 + $0x300] sm:$0xff]  }
  0x3d   :  { %2148 = vmatpush3.bf16.msra.mxu1 %v2337_v11  ;;  %2121 = vmatprep.subr.bf16.mxu0 %v2338_v12  ;;  %v2377_v11 = vld [vmem:[%s3085_s1 + $0x380] sm:$0xff]   ;;  %v2378_v12 = vld [vmem:[%s3085_s1 + $0x348] sm:$0xff]  }
  0x3e   :  { %2149 = vmatprep.subr.bf16.mxu1 %v2339_v13  ;;  %v2379_v13 = vld [vmem:[%s3085_s1 + $0x3c8] sm:$0xff]  }
  0x40   :  { %2122 = vmatpush3.bf16.msra.mxu0 %v2340_v14  ;;  %v2380_v14 = vld [vmem:[%s3085_s1 + $0x308] sm:$0xff]  }
  0x41   :  { %2150 = vmatpush3.bf16.msra.mxu1 %v2341_v15  ;;  %2163 = vmatprep.subr.bf16.mxu0 %v2342_v24  ;;  %v2381_v15 = vld [vmem:[%s3085_s1 + $0x388] sm:$0xff]  }
  0x42   :  { %2191 = vmatprep.subr.bf16.mxu1 %v2343_v25  ;;  %v2384_v25 = vld [vmem:[%s3085_s1 + $0x310] sm:$0xff]  }
  0x43   :  { %1369 = vmatmul.mubr.bf16.vlgmr.msra.gmra.mrb[8].mxu0 %v1894_v20  ;;  %v2382_v20 = vld [vmem:[%s3085_s1 + $0x350] sm:$0xff]  }
  0x44   :  { %1418 = vmatmul.mubr.bf16.vlgmr.msra.gmra.mrb[8].mxu1 %v1896_v22  ;;  %2164 = vmatpush3.bf16.msra.mxu0 %v2344_v26  ;;  %v43_v22 = vld [vmem:[%s3084_s0 + $0xa8] sm:$0xff] }
  0x45   :  { %2192 = vmatpush3.bf16.msra.mxu1 %v2345_v27  ;;  %2165 = vmatprep.subr.bf16.mxu0 %v2346_v28  ;;  %v1917_v24 = vcombine.high %v43_v22, %v51_v23  ;;  %v1916_v26 = vcombine.low %v43_v22, %v51_v23  ;;  %v2385_v27 = vld [vmem:[%s3085_s1 + $0x390] sm:$0xff]   ;;  %v2386_v28 = vld [vmem:[%s3085_s1 + $0x358] sm:$0xff]  }
  0x46   :  { %2193 = vmatprep.subr.bf16.mxu1 %v2347_v29  ;;  %1376 = vmatprep.mubr.bf16.mxu0 %v1911_v34  ;;  %v2387_v29 = vld [vmem:[%s3085_s1 + $0x3d8] sm:$0xff]   ;;  %v2392_v34 = vld [vmem:[%s3085_s1 + $0x320] sm:$0xff]  }
  0x47   :  { %1425 = vmatprep.mubr.bf16.mxu1 %v1913_v40  ;;  %v2398_v40 = vld [vmem:[%s3085_s1 + $0x370] sm:$0xff]  }
  0x48   :  { %2166 = vmatpush3.bf16.msra.mxu0 %v2348_v30  ;;  %v2388_v30 = vld [vmem:[%s3085_s1 + $0x318] sm:$0xff]  }
  0x49   :  { %2194 = vmatpush3.bf16.msra.mxu1 %v2349_v31  ;;  %2167 = vmatprep.subr.bf16.mxu0 %v2350_v36  ;;  %v2389_v31 = vld [vmem:[%s3085_s1 + $0x398] sm:$0xff]   ;;  %v2394_v36 = vld [vmem:[%s3085_s1 + $0x368] sm:$0xff]  }
  0x4a   :  { %2195 = vmatprep.subr.bf16.mxu1 %v2351_v37  ;;  %v2395_v37 = vld [vmem:[%s3085_s1 + $0x3e8] sm:$0xff]  }
  0x4b   :  { %1377 = vmatmul.mubr.bf16.gmra.mrb[12].mxu0 %v1910_v35  ;;  %v2393_v35 = vld [vmem:[%s3085_s1 + $0x3a0] sm:$0xff]  }
  0x4c   :  { %2168 = vmatpush3.bf16.msra.mxu0 %v2352_v41  ;;  %1426 = vmatmul.mubr.bf16.gmra.mrb[12].mxu1 %v1912_v42  ;;  %v2399_v41 = vld [vmem:[%s3085_s1 + $0x3f0] sm:$0xff]  }
  0x4d   :  { %2196 = vmatpush3.bf16.msra.mxu1 %v2353_v43  ;;  %2169 = vmatprep.subr.bf16.mxu0 %v2354_v44  ;;  %v2400_v42 = vld [vmem:[%s3085_s1 + $0x330] sm:$0xff]   ;;  %v2402_v44 = vld [vmem:[%s3085_s1 + $0x378] sm:$0xff]  }
  0x4e   :  { %2197 = vmatprep.subr.bf16.mxu1 %v2355_v45  ;;  %1466 = vmatprep.mubr.bf16.mxu0 %v1899_v3  ;;  %v2401_v43 = vld [vmem:[%s3085_s1 + $0x3b0] sm:$0xff]   ;;  %v2403_v45 = vld [vmem:[%s3085_s1 + $0x3f8] sm:$0xff]  }
  0x4f   :  { %1515 = vmatprep.mubr.bf16.mxu1 %v1901_v7 }
  0x50   :  { %2170 = vmatpush3.bf16.msra.mxu0 %v2356_v46  ;;  %v2404_v46 = vld [vmem:[%s3085_s1 + $0x338] sm:$0xff]  }
  0x51   :  { %2198 = vmatpush3.bf16.msra.mxu1 %v2357_v47  ;;  %2171 = vmatprep.subr.bf16.mxu0 %v2358_v48  ;;  %v2405_v47 = vld [vmem:[%s3085_s1 + $0x3b8] sm:$0xff]   ;;  %v28_v48 = vld [vmem:[%s3084_s0 + $0x30] sm:$0xff] }
  0x52   :  { %2199 = vmatprep.subr.bf16.mxu1 %v2359_v49  ;;  %v36_v49 = vld [vmem:[%s3084_s0 + $0x70] sm:$0xff] }
  0x54   :  { %2172 = vmatpush3.bf16.msra.mxu0 %v2360_v50  ;;  %v29_v50 = vld [vmem:[%s3084_s0 + $0x38] sm:$0xff] }
  0x55   :  { %2200 = vmatpush3.bf16.msra.mxu1 %v2361_v51  ;;  %2173 = vmatprep.subr.bf16.mxu0 %v2362_v52  ;;  %v1902_v51 = vcombine.low %v28_v48, %v36_v49  ;;  %v1903_v52 = vcombine.high %v28_v48, %v36_v49 }
  0x56   :  { %2201 = vmatprep.subr.bf16.mxu1 %v2363_v53  ;;  %v37_v53 = vld [vmem:[%s3084_s0 + $0x78] sm:$0xff] }
  0x58   :  { %2174 = vmatpush3.bf16.msra.mxu0 %v2364_v54  ;;  %v44_v54 = vld [vmem:[%s3084_s0 + $0xb0] sm:$0xff] }
  0x59   :  { %2202 = vmatpush3.bf16.msra.mxu1 %v2365_v55  ;;  %2175 = vmatprep.subr.bf16.mxu0 %v2366_v56  ;;  %v52_v55 = vld [vmem:[%s3084_s0 + $0xf0] sm:$0xff]  ;;  %v1904_v56 = vcombine.low %v29_v50, %v37_v53 }
  0x5a   :  { %2203 = vmatprep.subr.bf16.mxu1 %v2367_v57  ;;  %v1905_v57 = vcombine.high %v29_v50, %v37_v53 }
  0x5c   :  { %2176 = vmatpush3.bf16.msra.mxu0 %v2368_v58  ;;  %v1919_v58 = vcombine.high %v44_v54, %v52_v55 }
  0x5d   :  { %2204 = vmatpush3.bf16.msra.mxu1 %v2369_v59  ;;  %2177 = vmatprep.subr.bf16.mxu0 %v2370_v60  ;;  %v45_v59 = vld [vmem:[%s3084_s0 + $0xb8] sm:$0xff] }
  0x5e   :  { %2205 = vmatprep.subr.bf16.mxu1 %v2371_v61  ;;  %v53_v60 = vld [vmem:[%s3084_s0 + $0xf8] sm:$0xff] }
  0x60   :  { %2178 = vmatpush3.bf16.msra.mxu0 %v2372_v62 }
  0x61   :  { %2206 = vmatpush3.bf16.msra.mxu1 %v2373_v63  ;;  %2219 = vmatprep.subr.bf16.mxu0 %v2374_v8 }
  0x62   :  { %2247 = vmatprep.subr.bf16.mxu1 %v2375_v9 }
  0x63   :  { %1467 = vmatmul.mubr.bf16.vlgmr.msra.gmra.mrb[16].mxu0 %v1898_v2 }
  0x64   :  { %1516 = vmatmul.mubr.bf16.vlgmr.msra.gmra.mrb[16].mxu1 %v1900_v6  ;;  %2220 = vmatpush3.bf16.msra.mxu0 %v2376_v10 }
  0x65   :  { %2248 = vmatpush3.bf16.msra.mxu1 %v2377_v11  ;;  %2221 = vmatprep.subr.bf16.mxu0 %v2378_v12 }
  0x66   :  { %2249 = vmatprep.subr.bf16.mxu1 %v2379_v13  ;;  %1474 = vmatprep.mubr.bf16.mxu0 %v1915_v18 }
  0x67   :  { %1523 = vmatprep.mubr.bf16.mxu1 %v1917_v24 }
  0x68   :  { %2222 = vmatpush3.bf16.msra.mxu0 %v2380_v14 }
  0x69   :  { %2250 = vmatpush3.bf16.msra.mxu1 %v2381_v15  ;;  %2223 = vmatprep.subr.bf16.mxu0 %v2382_v20 }
  0x6a   :  { %2251 = vmatprep.subr.bf16.mxu1 %v2383_v21 }
  0x6b   :  { %1475 = vmatmul.mubr.bf16.gmra.mrb[20].mxu0 %v1914_v19 }
  0x6c   :  { %2224 = vmatpush3.bf16.msra.mxu0 %v2384_v25  ;;  %1524 = vmatmul.mubr.bf16.gmra.mrb[20].mxu1 %v1916_v26 }
  0x6d   :  { %2252 = vmatpush3.bf16.msra.mxu1 %v2385_v27  ;;  %2225 = vmatprep.subr.bf16.mxu0 %v2386_v28 }
  0x6e   :  { %2253 = vmatprep.subr.bf16.mxu1 %v2387_v29 }
  0x70   :  { %2226 = vmatpush3.bf16.msra.mxu0 %v2388_v30 }
  0x71   :  { %2254 = vmatpush3.bf16.msra.mxu1 %v2389_v31  ;;  %2227 = vmatprep.subr.bf16.mxu0 %v2390_v32 }
  0x72   :  { %2255 = vmatprep.subr.bf16.mxu1 %v2391_v33 }
  0x74   :  { %2228 = vmatpush3.bf16.msra.mxu0 %v2392_v34 }
  0x75   :  { %2256 = vmatpush3.bf16.msra.mxu1 %v2393_v35  ;;  %2229 = vmatprep.subr.bf16.mxu0 %v2394_v36 }
  0x76   :  { %2257 = vmatprep.subr.bf16.mxu1 %v2395_v37 }
  0x78   :  { %2230 = vmatpush3.bf16.msra.mxu0 %v2396_v38 }
  0x79   :  { %2258 = vmatpush3.bf16.msra.mxu1 %v2397_v39  ;;  %2231 = vmatprep.subr.bf16.mxu0 %v2398_v40 }
  0x7a   :  { %2259 = vmatprep.subr.bf16.mxu1 %v2399_v41 }
  0x7c   :  { %2232 = vmatpush3.bf16.msra.mxu0 %v2400_v42 }
  0x7d   :  { %2260 = vmatpush3.bf16.msra.mxu1 %v2401_v43  ;;  %2233 = vmatprep.subr.bf16.mxu0 %v2402_v44 }
  0x7e   :  { %2261 = vmatprep.subr.bf16.mxu1 %v2403_v45 }
  0x80   :  { %2234 = vmatpush3.bf16.msra.mxu0 %v2404_v46 }
  0x81   :  { %2262 = vmatpush3.bf16.msra.mxu1 %v2405_v47 }
  0x82   :  { %12 = vsyncpa [#allocation5], 0  ;;  %1564 = vmatprep.mubr.bf16.mxu0 %v1903_v52  ;;  %v1921_v61 = vcombine.high %v45_v59, %v53_v60  ;;  %1613 = vmatprep.mubr.bf16.mxu1 %v1905_v57  ;;  %v1918_v62 = vcombine.low %v44_v54, %v52_v55  ;;  %v1920_v63 = vcombine.low %v45_v59, %v53_v60  ;;  %v1679_v0 = vld [vmem:[%s3087_s3] sm:$0xff]  ;;  %v1681_v1 = vld [vmem:[%s3087_s3 + $0x10] sm:$0xff]  ;;  %vm1658_vm0 = vcmask 1041409  }
  0x83   :  { %1565 = vmatmul.mubr.bf16.vlgmr.msra.gmra.mrb[24].mxu0 %v1902_v51  ;;  %v1683_v2 = vld [vmem:[%s3087_s3 + $0x20] sm:$0xff]  ;;  %v1685_v3 = vld [vmem:[%s3087_s3 + $0x30] sm:$0xff]  ;;  %v1687_v4 = vunpack.c.l.bf16 %v1679_v0  ;;  %v1688_v5 = vunpack.c.h.bf16 %v1679_v0  ;;  %v1691_v6 = vunpack.c.l.bf16 %v1681_v1  ;;  %v1692_v7 = vunpack.c.h.bf16 %v1681_v1  ;;  %v1680_v8 = vld [vmem:[%s3087_s3 + $0x8] sm:$0xff] }
  0x84   :  { %1614 = vmatmul.mubr.bf16.vlgmr.msra.gmra.mrb[24].mxu1 %v1904_v56  ;;  %1572 = vmatprep.mubr.bf16.mxu0 %v1919_v58  ;;  %v1682_v9 = vld [vmem:[%s3087_s3 + $0x18] sm:$0xff]  ;;  %v1684_v10 = vld [vmem:[%s3087_s3 + $0x28] sm:$0xff]  ;;  %v1695_v11 = vunpack.c.l.bf16 %v1683_v2  ;;  %v1696_v12 = vunpack.c.h.bf16 %v1683_v2  ;;  %v1699_v13 = vunpack.c.l.bf16 %v1685_v3  ;;  %v1700_v14 = vunpack.c.h.bf16 %v1685_v3 }
  0x85   :  { %1621 = vmatprep.mubr.bf16.mxu1 %v1921_v61  ;;  %v1686_v15 = vld [vmem:[%s3087_s3 + $0x38] sm:$0xff]  ;;  %v1689_v16 = vunpack.c.l.bf16 %v1680_v8  ;;  %v1693_v17 = vunpack.c.l.bf16 %v1682_v9  ;;  %v1697_v18 = vunpack.c.l.bf16 %v1684_v10  ;;  %v1703_v19 = vmax.f32 %v1687_v4, %v1691_v6 }
  0x86   :  { %v1701_v20 = vunpack.c.l.bf16 %v1686_v15  ;;  %v1710_v21 = vmax.f32 %v1688_v5, %v1692_v7  ;;  %v1731_v22 = vmax.f32 %v1695_v11, %v1699_v13  ;;  %v1738_v23 = vmax.f32 %v1696_v12, %v1700_v14 }
  0x87   :  { %v1690_v24 = vunpack.c.h.bf16 %v1680_v8  ;;  %v1694_v25 = vunpack.c.h.bf16 %v1682_v9  ;;  %v1698_v26 = vunpack.c.h.bf16 %v1684_v10  ;;  %v1702_v27 = vunpack.c.h.bf16 %v1686_v15 }
  0x88   :  { %v1704_v28 = vrot.slane %v1703_v19, 4  ;;  %v1711_v29 = vrot.slane %v1710_v21, 4  ;;  %v1717_v30 = vmax.f32 %v1689_v16, %v1693_v17  ;;  %v1732_v31 = vrot.slane %v1731_v22, 4 }
  0x89   :  { %v1724_v32 = vmax.f32 %v1690_v24, %v1694_v25  ;;  %v1739_v33 = vrot.slane %v1738_v23, 4  ;;  %v1745_v34 = vmax.f32 %v1697_v18, %v1701_v20  ;;  %v1752_v35 = vmax.f32 %v1698_v26, %v1702_v27 }
  0x8a   :  { %v1705_v36 = vmax.f32 %v1703_v19, %v1704_v28  ;;  %v1712_v37 = vmax.f32 %v1710_v21, %v1711_v29  ;;  %v1718_v38 = vrot.slane %v1717_v30, 4  ;;  %v1733_v39 = vmax.f32 %v1731_v22, %v1732_v31 }
  0x8b   :  { %1573 = vmatmul.mubr.bf16.gmra.mrb[28].mxu0 %v1918_v62  ;;  %v1725_v40 = vrot.slane %v1724_v32, 4  ;;  %v1740_v41 = vmax.f32 %v1738_v23, %v1739_v33  ;;  %v1746_v42 = vrot.slane %v1745_v34, 4  ;;  %v1753_v43 = vrot.slane %v1752_v35, 4 }
  0x8c   :  { %1622 = vmatmul.mubr.bf16.gmra.mrb[28].mxu1 %v1920_v63  ;;  %v1706_v44 = vrot.slane %v1705_v36, 2  ;;  %v1713_v45 = vrot.slane %v1712_v37, 2  ;;  %v1719_v46 = vmax.f32 %v1717_v30, %v1718_v38  ;;  %v1734_v47 = vrot.slane %v1733_v39, 2 }
  0x8d   :  { %v1726_v48 = vmax.f32 %v1724_v32, %v1725_v40  ;;  %v1741_v49 = vrot.slane %v1740_v41, 2  ;;  %v1747_v50 = vmax.f32 %v1745_v34, %v1746_v42  ;;  %v1754_v51 = vmax.f32 %v1752_v35, %v1753_v43 }
  0x8e   :  { %v1707_v52 = vmax.f32 %v1705_v36, %v1706_v44  ;;  %v1714_v53 = vmax.f32 %v1712_v37, %v1713_v45  ;;  %v1720_v54 = vrot.slane %v1719_v46, 2  ;;  %v1735_v55 = vmax.f32 %v1733_v39, %v1734_v47 }
  0x8f   :  { %v1727_v56 = vrot.slane %v1726_v48, 2  ;;  %v1742_v57 = vmax.f32 %v1740_v41, %v1741_v49  ;;  %v1748_v58 = vrot.slane %v1747_v50, 2  ;;  %v1755_v59 = vrot.slane %v1754_v51, 2 }
  0x90   :  { %v1708_v60 = vrot.slane %v1707_v52, 1  ;;  %v1715_v61 = vrot.slane %v1714_v53, 1  ;;  %v1721_v62 = vmax.f32 %v1719_v46, %v1720_v54  ;;  %v1736_v63 = vrot.slane %v1735_v55, 1 }
  0x91   :  { %v1728_v0 = vmax.f32 %v1726_v48, %v1727_v56  ;;  %v1743_v1 = vrot.slane %v1742_v57, 1  ;;  %v1749_v2 = vmax.f32 %v1747_v50, %v1748_v58  ;;  %v1756_v3 = vmax.f32 %v1754_v51, %v1755_v59 }
  0x92   :  { %v2995_v4 = vmax.f32 %v1707_v52, %v1708_v60  ;;  %v2997_v5 = vmax.f32 %v1714_v53, %v1715_v61  ;;  %v1722_v6 = vrot.slane %v1721_v62, 1  ;;  %v2999_v7 = vmax.f32 %v1735_v55, %v1736_v63 }
  0x93   :  { %v1729_v8 = vrot.slane %v1728_v0, 1  ;;  %v3001_v9 = vmax.f32 %v1742_v57, %v1743_v1  ;;  %v1750_v10 = vrot.slane %v1749_v2, 1  ;;  %v1757_v11 = vrot.slane %v1756_v3, 1 }
  0x94   :  { %v3003_v12 = vmax.f32 %v1721_v62, %v1722_v6  ;;  %v1759_v13 = vmul.f32 %v2995_v4, %v2995_v4  ;;  %v1760_v14 = vmul.f32 %v2997_v5, %v2997_v5  ;;  %vm1661_vm1 = vcmask 1041408  }
  0x95   :  { %v3009_v15 = vmax.f32 %v1728_v0, %v1729_v8  ;;  %v3011_v16 = vmax.f32 %v1749_v2, %v1750_v10  ;;  %v3013_v17 = vmax.f32 %v1756_v3, %v1757_v11  ;;  %v1763_v19 = vmul.f32 %v2999_v7, %v2999_v7 }
  0x96   :  { %v1761_v18 = vmul.f32 %v3003_v12, %v3003_v12  ;;  %v1764_v20 = vmul.f32 %v3001_v9, %v3001_v9  ;;  %vm1854_vm2 = vcmask 1043459   ;;  %vm1856_vm3 = vcmask 1045509  }
  0x97   :  { %v1762_v21 = vmul.f32 %v3009_v15, %v3009_v15  ;;  %v1765_v22 = vmul.f32 %v3011_v16, %v3011_v16  ;;  %v1766_v23 = vmul.f32 %v3013_v17, %v3013_v17  ;;  %v1775_v24 = vsel %vm1658_vm0, %v1763_v19, %v1759_v13 }
  0x98   :  { %v1776_v25 = vsel %vm1658_vm0, %v1764_v20, %v1760_v14  ;;  %v1783_v29 = vsel %vm1661_vm1, %v1775_v24, 0.0  ;;  %vm1858_vm4 = vcmask 1047559  }
  0x99   :  { %v1777_v27 = vsel %vm1658_vm0, %v1765_v22, %v1761_v18  ;;  %v1778_v28 = vsel %vm1658_vm0, %v1766_v23, %v1762_v21  ;;  %v1784_v30 = vsel %vm1661_vm1, %v1776_v25, 0.0 }
  0x9a   :  { %v1785_v33 = vadd.f32 %v1784_v30, %v1783_v29  ;;  %v1786_v34 = vsel %vm1661_vm1, %v1777_v27, 0.0  ;;  %v1788_v38 = vsel %vm1661_vm1, %v1778_v28, 0.0 }
  0x9c   :  { %v1787_v42 = vadd.f32 %v1786_v34, %v1785_v33 }
  0x9e   :  { %v1789_v47 = vadd.f32 %v1788_v38, %v1787_v42 }
  0xa0   :  { %1790 = vadd.xlane.f32.xlu0 %v1789_v47 }
  0xf6   :  { %v2067_v26 = vpop.f32.mrb[0].mxu0 }
  0xf7   :  { %v2095_v31 = vpop.f32.mrb[0].mxu1  ;;  %v2068_v32 = vpop.f32.mrb[1].mxu0 }
  0xf8   :  { %v2069_v35 = vadd.f32 %v2068_v32, %v2067_v26  ;;  %v2096_v36 = vpop.f32.mrb[1].mxu1  ;;  %v2070_v37 = vpop.f32.mrb[2].mxu0 }
  0xf9   :  { %v2097_v39 = vadd.f32 %v2096_v36, %v2095_v31  ;;  %v2098_v40 = vpop.f32.mrb[2].mxu1  ;;  %v2071_v41 = vpop.f32.mrb[3].mxu0 }
  0xfa   :  { %v2072_v43 = vadd.f32 %v2071_v41, %v2070_v37  ;;  %v2099_v44 = vpop.f32.mrb[3].mxu1 }
  0xfb   :  { %v1322_v45 = vadd.f32 %v2097_v39, %v2069_v35  ;;  %v2100_v46 = vadd.f32 %v2099_v44, %v2098_v40 }
  0xfd   :  { %v1325_v48 = vadd.f32 %v2100_v46, %v2072_v43 }
  0xfe   :  { %v2073_v49 = vpop.f32.mrb[4].mxu0 }
  0xff   :  { %v2101_v50 = vpop.f32.mrb[4].mxu1  ;;  %v2074_v51 = vpop.f32.mrb[5].mxu0 }
 0x100   :  { %v2075_v52 = vadd.f32 %v2074_v51, %v2073_v49  ;;  %v2102_v53 = vpop.f32.mrb[5].mxu1  ;;  %v2076_v54 = vpop.f32.mrb[6].mxu0 }
 0x101   :  { %v2103_v55 = vadd.f32 %v2102_v53, %v2101_v50  ;;  %v2104_v56 = vpop.f32.mrb[6].mxu1  ;;  %v2077_v57 = vpop.f32.mrb[7].mxu0 }
 0x102   :  { %v2078_v58 = vadd.f32 %v2077_v57, %v2076_v54  ;;  %v2105_v59 = vpop.f32.mrb[7].mxu1 }
 0x103   :  { %v1330_v60 = vadd.f32 %v2103_v55, %v2075_v52  ;;  %v2106_v61 = vadd.f32 %v2105_v59, %v2104_v56 }
 0x105   :  { %v1333_v62 = vadd.f32 %v2106_v61, %v2078_v58 }
 0x116   :  { %v2123_v63 = vpop.f32.mrb[8].mxu0 }
 0x117   :  { %v2151_v0 = vpop.f32.mrb[8].mxu1  ;;  %v2124_v1 = vpop.f32.mrb[9].mxu0 }
 0x118   :  { %v2152_v2 = vpop.f32.mrb[9].mxu1  ;;  %v2125_v3 = vadd.f32 %v2124_v1, %v2123_v63  ;;  %v2126_v8 = vpop.f32.mrb[10].mxu0 }
 0x119   :  { %v2153_v6 = vadd.f32 %v2152_v2, %v2151_v0  ;;  %v2154_v10 = vpop.f32.mrb[10].mxu1  ;;  %v2127_v11 = vpop.f32.mrb[11].mxu0 }
 0x11a   :  { %v2155_v13 = vpop.f32.mrb[11].mxu1  ;;  %v1371_v14 = vadd.f32 %v2125_v3, %v1322_v45  ;;  %v2128_v18 = vadd.f32 %v2127_v11, %v2126_v8 }
 0x11b   :  { %v2156_v19 = vadd.f32 %v2155_v13, %v2154_v10 }
 0x11c   :  { %v1420_v20 = vadd.f32 %v2153_v6, %v1371_v14  ;;  %v1374_v21 = vadd.f32 %v2128_v18, %v1325_v48 }
 0x11e   :  { %v1423_v22 = vadd.f32 %v2156_v19, %v1374_v21  ;;  %v2129_v23 = vpop.f32.mrb[12].mxu0 }
 0x11f   :  { %v2130_v24 = vpop.f32.mrb[13].mxu0  ;;  %v2157_v29 = vpop.f32.mrb[12].mxu1 }
 0x120   :  { %v2131_v25 = vadd.f32 %v2130_v24, %v2129_v23  ;;  %v2132_v26 = vpop.f32.mrb[14].mxu0  ;;  %v2158_v31 = vpop.f32.mrb[13].mxu1 }
 0x121   :  { %v2133_v27 = vpop.f32.mrb[15].mxu0  ;;  %v2159_v33 = vadd.f32 %v2158_v31, %v2157_v29  ;;  %v2160_v34 = vpop.f32.mrb[14].mxu1 }
 0x122   :  { %v1379_v28 = vadd.f32 %v2131_v25, %v1330_v60  ;;  %v2134_v30 = vadd.f32 %v2133_v27, %v2132_v26  ;;  %v2161_v35 = vpop.f32.mrb[15].mxu1 }
 0x123   :  { %v2162_v37 = vadd.f32 %v2161_v35, %v2160_v34 }
 0x124   :  { %v1382_v32 = vadd.f32 %v2134_v30, %v1333_v62  ;;  %v1428_v36 = vadd.f32 %v2159_v33, %v1379_v28 }
 0x126   :  { %v1431_v38 = vadd.f32 %v2162_v37, %v1382_v32 }
 0x136   :  { %v2179_v39 = vpop.f32.mrb[16].mxu0 }
 0x137   :  { %v2207_v40 = vpop.f32.mrb[16].mxu1  ;;  %v2180_v41 = vpop.f32.mrb[17].mxu0 }
 0x138   :  { %v2181_v42 = vadd.f32 %v2180_v41, %v2179_v39  ;;  %v2208_v43 = vpop.f32.mrb[17].mxu1  ;;  %v2182_v44 = vpop.f32.mrb[18].mxu0 }
 0x139   :  { %v2209_v45 = vadd.f32 %v2208_v43, %v2207_v40  ;;  %v2210_v46 = vpop.f32.mrb[18].mxu1  ;;  %v2183_v47 = vpop.f32.mrb[19].mxu0 }
 0x13a   :  { %v1469_v48 = vadd.f32 %v2181_v42, %v1420_v20  ;;  %v2184_v49 = vadd.f32 %v2183_v47, %v2182_v44  ;;  %v2211_v50 = vpop.f32.mrb[19].mxu1 }
 0x13b   :  { %v2212_v51 = vadd.f32 %v2211_v50, %v2210_v46 }
 0x13c   :  { %v1518_v52 = vadd.f32 %v2209_v45, %v1469_v48  ;;  %v1472_v53 = vadd.f32 %v2184_v49, %v1423_v22 }
 0x13e   :  { %v1521_v54 = vadd.f32 %v2212_v51, %v1472_v53  ;;  %v2185_v55 = vpop.f32.mrb[20].mxu0 }
 0x13f   :  { %v2186_v56 = vpop.f32.mrb[21].mxu0  ;;  %v2213_v59 = vpop.f32.mrb[20].mxu1 }
 0x140   :  { %v2187_v57 = vadd.f32 %v2186_v56, %v2185_v55  ;;  %v2188_v58 = vpop.f32.mrb[22].mxu0  ;;  %v2214_v63 = vpop.f32.mrb[21].mxu1 }
 0x141   :  { %v2189_v60 = vpop.f32.mrb[23].mxu0  ;;  %v2215_v0 = vadd.f32 %v2214_v63, %v2213_v59  ;;  %v2216_v1 = vpop.f32.mrb[22].mxu1 }
 0x142   :  { %v1477_v61 = vadd.f32 %v2187_v57, %v1428_v36  ;;  %v2190_v62 = vadd.f32 %v2189_v60, %v2188_v58  ;;  %v2217_v3 = vpop.f32.mrb[23].mxu1  ;;  %v2050_v60 = vld [vmem:[%s3086_s2] ss:$0 sm:$0xff]  ;;  %s2459_s2 = smov [#allocation4]  }
 0x143   :  { %v2218_v8 = vadd.f32 %v2217_v3, %v2216_v1  ;;  %s1878_s28 = sshll.u32 %s2459_s2, 4  ;;  %s1879_s28 = int_to_ptr.vmem [resolvable:$true] %s1878_s28 }
 0x144   :  { %v1480_v2 = vadd.f32 %v2190_v62, %v1431_v38  ;;  %v1526_v6 = vadd.f32 %v2215_v0, %v1477_v61  ;;  %s2410_s29 = scalar_lea.vmem %s1879_s28, 128  ;;  %p2415_p1 = scmp.lt.s32.totalorder %s1879_s28, %s1879_s28 }
 0x145   :  { %p2411_p0 = scmp.ne.s32.totalorder %s1879_s28, %s2410_s29  ;;  %p2416_p2 = scmp.lt.s32.totalorder %s2410_s29, %s2410_s29 }
 0x146   :  { %v1529_v10 = vadd.f32 %v2218_v8, %v1480_v2  ;;  %v1791_v8 = vpop.xlane.xlu0 %1790 }
 0x147   :  { %p2417_p3 = por %p2416_p2, %p2415_p1 }
 0x149   :  { %p2418_p4 = pnand %p2417_p3, %p2411_p0 }
 0x156   :  { %v2235_v11 = vpop.f32.mrb[24].mxu0 }
 0x157   :  { %v2263_v13 = vpop.f32.mrb[24].mxu1  ;;  %v2236_v14 = vpop.f32.mrb[25].mxu0 }
 0x158   :  { %v2237_v18 = vadd.f32 %v2236_v14, %v2235_v11  ;;  %v2264_v19 = vpop.f32.mrb[25].mxu1  ;;  %v2238_v20 = vpop.f32.mrb[26].mxu0  ;;  %v2458_v11 = vmov 1983009808   ;;  %v1819_v14 = vlaneseq }
 0x159   :  { %v2265_v21 = vadd.f32 %v2264_v19, %v2263_v13  ;;  %v2266_v22 = vpop.f32.mrb[26].mxu1  ;;  %v2239_v23 = vpop.f32.mrb[27].mxu0  ;;  %v1817_v13 = vunpack.c.l.s4 %v2458_v11 }
 0x15a   :  { %v1567_v24 = vadd.f32 %v2237_v18, %v1518_v52  ;;  %v2240_v25 = vadd.f32 %v2239_v23, %v2238_v20  ;;  %v2267_v26 = vpop.f32.mrb[27].mxu1  ;;  %v1820_v20 = vshrl.u32 %v1819_v14, 7 }
 0x15b   :  { %v2268_v27 = vadd.f32 %v2267_v26, %v2266_v22  ;;  %v1818_v19 = vunpack.c.0.s8 %v1817_v13 }
 0x15c   :  { %v1616_v28 = vadd.f32 %v2265_v21, %v1567_v24  ;;  %v1570_v29 = vadd.f32 %v2240_v25, %v1521_v54 }
 0x15e   :  { %v1619_v30 = vadd.f32 %v2268_v27, %v1570_v29  ;;  %v2241_v31 = vpop.f32.mrb[28].mxu0 }
 0x15f   :  { %v2269_v32 = vpop.f32.mrb[28].mxu1  ;;  %v2242_v33 = vpop.f32.mrb[29].mxu0 }
 0x160   :  { %v1630_v34 = vmax.f32 %v1616_v28, %v1619_v30  ;;  %v2243_v35 = vadd.f32 %v2242_v33, %v2241_v31  ;;  %v2270_v36 = vpop.f32.mrb[29].mxu1  ;;  %v2244_v37 = vpop.f32.mrb[30].mxu0 }
 0x161   :  { %v2271_v38 = vadd.f32 %v2270_v36, %v2269_v32  ;;  %v2272_v39 = vpop.f32.mrb[30].mxu1  ;;  %v2245_v40 = vpop.f32.mrb[31].mxu0  ;;  %v1821_v32 = vsub.s32 %v1818_v19, %v1820_v20 }
 0x162   :  { %v1631_v41 = vrot.slane %v1630_v34, 4  ;;  %v1575_v42 = vadd.f32 %v2243_v35, %v1526_v6  ;;  %v2246_v43 = vadd.f32 %v2245_v40, %v2244_v37  ;;  %v2273_v44 = vpop.f32.mrb[31].mxu1 }
 0x163   :  { %v2274_v45 = vadd.f32 %v2273_v44, %v2272_v39 }
 0x164   :  { %v1632_v46 = vmax.f32 %v1630_v34, %v1631_v41  ;;  %v1624_v47 = vadd.f32 %v2271_v38, %v1575_v42  ;;  %v1578_v48 = vadd.f32 %v2246_v43, %v1529_v10  ;;  %v1792_v10 = vmax.f32 %v1791_v8, 1e-24 }
 0x166   :  { %v1633_v49 = vrot.slane %v1632_v46, 2  ;;  %v1627_v50 = vadd.f32 %v2274_v45, %v1578_v48  ;;  %2406 = vrsqrt.f32 %v1792_v10 }
 0x168   :  { %v1637_v51 = vmax.f32 %v1624_v47, %v1627_v50  ;;  %v1634_v52 = vmax.f32 %v1632_v46, %v1633_v49 }
 0x16a   :  { %v1638_v53 = vrot.slane %v1637_v51, 4  ;;  %v1635_v55 = vrot.slane %v1634_v52, 1 }
 0x16c   :  { %v1639_v54 = vmax.f32 %v1637_v51, %v1638_v53  ;;  %v1636_v59 = vmax.f32 %v1634_v52, %v1635_v55 }
 0x16e   :  { %v1640_v56 = vrot.slane %v1639_v54, 2  ;;  %v3038_v62 = vadd.f32 %v2050_v60, %v1636_v59 }
 0x170   :  { %v1641_v57 = vmax.f32 %v1639_v54, %v1640_v56  ;;  %v1653_v1 = vmul.f32 %v3038_v62, %v3038_v62  ;;  %v2407_v18 = vpop.eup %2406 }
 0x171   :  { %v1795_v21 = vrot.slane %v2407_v18, 1  ;;  %v1798_v22 = vmul.f32 %v2407_v18, %v2995_v4  ;;  %v1799_v23 = vmul.f32 %v2407_v18, %v2997_v5  ;;  %v1800_v24 = vmul.f32 %v2407_v18, %v3003_v12 }
 0x172   :  { %v1642_v58 = vrot.slane %v1641_v57, 1  ;;  %v1801_v25 = vmul.f32 %v2407_v18, %v3009_v15 }
 0x173   :  { %v1802_v26 = vmul.f32 %v1795_v21, %v2999_v7  ;;  %v1803_v27 = vmul.f32 %v1795_v21, %v3001_v9  ;;  %v1804_v28 = vmul.f32 %v1795_v21, %v3011_v16  ;;  %v1805_v29 = vmul.f32 %v1795_v21, %v3013_v17 }
 0x174   :  { %v1643_v61 = vmax.f32 %v1641_v57, %v1642_v58  ;;  %v1814_v30 = vcombine.low %v1798_v22, %v1799_v23  ;;  %v1815_v31 = vcombine.low %v1800_v24, %v1801_v25 }
 0x175   :  { %v1831_v33 = vcombine.low %v1802_v26, %v1803_v27  ;;  %v1832_v34 = vcombine.low %v1804_v28, %v1805_v29 }
 0x176   :  { %v3040_v63 = vadd.f32 %v2050_v60, %v1643_v61  ;;  %v1822_v4 = vrot.slane %v1814_v30, %v1821_v32  ;;  %v1829_v35 = vrot.slane %v1815_v31, %v1821_v32 }
 0x177   :  { %v1839_v5 = vrot.slane %v1831_v33, %v1821_v32  ;;  %v1846_v36 = vrot.slane %v1832_v34, %v1821_v32 }
 0x178   :  { %v1654_v0 = vmul.f32 %v3040_v63, %v3040_v63  ;;  %v1830_v12 = vcombine.low %v1822_v4, %v1829_v35 }
 0x179   :  { %v1847_v37 = vcombine.low %v1839_v5, %v1846_v36 }
 0x17a   :  { %v1657_v2 = vrot.slane %v1654_v0, 7 }
 0x17b   :  { %v1852_v15 = vrot.slane %v1847_v37, 7 }
 0x17c   :  { %v1659_v3 = vsel %vm1658_vm0, %v1657_v2, %v1653_v1 }
 0x17d   :  { %v1662_v6 = vsel %vm1661_vm1, %v1659_v3, 0.0  ;;  %v1853_v7 = vsel %vm1658_vm0, %v1852_v15, %v1830_v12 }
 0x17e   :  { %1663 = vadd.xlane.f32.xlu0 %v1662_v6  ;;  %v1855_v9 = vsel %vm1854_vm2, %v1852_v15, %v1853_v7 }
 0x17f   :  { %v1857_v16 = vsel %vm1856_vm3, %v1852_v15, %v1855_v9 }
 0x180   :  { %v1859_v17 = vsel %vm1858_vm4, %v1852_v15, %v1857_v16 }
 0x181   :  { %1861 = vst [vmem:[#allocation4] sm:$0xff] %v1859_v17 }
 0x182   :  { %2421 = shalt.err (!%p2418_p4)
}
 0x183   :  { %s2422_s6 = scalar_lea.hbm %s3089_s5, 128 }
 0x184   :  { %p2423_p5 = scmp.ne.s32.totalorder %s3089_s5, %s2422_s6  ;;  %p2426_p6 = scmp.lt.u32.totalorder %s2422_s6, %s3089_s5 }
 0x186   :  { %p2428_p7 = pnand %p2426_p6, %p2423_p5 }
 0x188   :  { %2431 = shalt.err (!%p2428_p7)
}
 0x189   :  { %1881 = dma.vmem_to_hbm [thread:$0]  %s1879_s28, 128, %s3089_s5, [#allocation5]  }
 0x18a   :  { %s2460_s13 = smov [#allocation2]  }
 0x18b   :  { %s1868_s14 = sshll.u32 %s2460_s13, 4  ;;  %s1869_s14 = int_to_ptr.vmem [resolvable:$true] %s1868_s14 }
 0x18c   :  { %s2432_s15 = scalar_lea.vmem %s1869_s14, 32  ;;  %p2437_p9 = scmp.lt.s32.totalorder %s1869_s14, %s1869_s14 }
 0x18d   :  { %p2433_p8 = scmp.ne.s32.totalorder %s1869_s14, %s2432_s15  ;;  %p2438_p10 = scmp.lt.s32.totalorder %s2432_s15, %s2432_s15 }
 0x18f   :  { %p2439_p11 = por %p2438_p10, %p2437_p9 }
 0x191   :  { %p2440_p12 = pnand %p2439_p11, %p2433_p8 }
 0x20b   :  { %v1664_v38 = vpop.xlane.xlu0 %1663 }
 0x20c   :  { %v1665_v39 = vmax.f32 %v1664_v38, 1e-24 }
 0x20e   :  { %2408 = vrsqrt.f32 %v1665_v39 }
 0x218   :  { %v2409_v40 = vpop.eup %2408 }
 0x219   :  { %v1668_v41 = vrot.slane %v2409_v40, 1  ;;  %v1671_v43 = vmul.f32 %v2409_v40, %v3038_v62 }
 0x21b   :  { %v1672_v42 = vmul.f32 %v1668_v41, %v3040_v63 }
 0x21d   :  { %v1675_v44 = vrot.slane %v1672_v42, 7 }
 0x21f   :  { %v1676_v45 = vsel %vm1658_vm0, %v1675_v44, %v1671_v43 }
 0x220   :  { %1678 = vst [vmem:[#allocation2] sm:$0x3] %v1676_v45 }
 0x221   :  { %2443 = shalt.err (!%p2440_p12)
}
 0x222   :  { %s2444_s16 = scalar_lea.hbm %s3088_s4, 32 }
 0x223   :  { %p2445_p13 = scmp.ne.s32.totalorder %s3088_s4, %s2444_s16  ;;  %p2448_p0 = scmp.lt.u32.totalorder %s2444_s16, %s3088_s4 }
 0x225   :  { %p2450_p1 = pnand %p2448_p0, %p2445_p13 }
 0x227   :  { %2453 = shalt.err (!%p2450_p1)
}
 0x228   :  { %1871 = dma.vmem_to_hbm [thread:$0]  %s1869_s14, 32, %s3088_s4, [#allocation3]  }
 0x229   :  { %2454 = dma.done.wait [#allocation3], 32  }
 0x22a   :  { %2455 = vsyncadd [#allocation3], 4294967264 }
 0x22b   :  { %2456 = dma.done.wait [#allocation5], 128  }
 0x22c   :  { %2457 = vsyncadd [#allocation5], 4294967168 }
 0x22d   :  { %1888 = vsyncpa [#allocation3], 1 }
 0x22e   :  { %1889 = vsyncpa [#allocation5], 1 }

</bundles_post_ra>
